<compile_context>
chip_gen: v5e
topology: v5e:2x2
jax: 0.10.0
libtpu: 0.0.40
codegen_flags: <defaults>
</compile_context>

<pallas_src>
import jax
import jax.numpy as jnp
from jax.experimental import pallas as pl
from jax.experimental.pallas import tpu as pltpu


def _identity_kernel(x_ref, o_ref):
    # Pure pass-through: the reference forward has no ops.
    o_ref[...] = x_ref[...]


def _pallas_identity(x: jax.Array) -> jax.Array:
    """Lane-dense, row-tiled identity copy through VMEM (debug/test path)."""
    orig_shape = x.shape
    n = x.size
    if n == 0:
        return x

    # Lane-dense layout: widest lane count (multiple of 128) dividing the
    # element count.  If none divides, skip the kernel entirely rather than
    # materializing pad/slice copies (each would be a full extra HBM pass).
    lanes = None
    for cand in (512, 256, 128):
        if n % cand == 0:
            lanes = cand
            break
    if lanes is None:
        return x

    rows = n // lanes
    x2d = x.reshape(rows, lanes)
    itemsize = jnp.dtype(x.dtype).itemsize

    # Row tiling: ~2 MiB per buffer (multiple of 8 rows).  With BlockSpec
    # double-buffering of input + output that is ~8 MiB of VMEM — safely
    # inside v5e's 16 MiB scoped default and near HBM roofline on v6e/v7x.
    target_tile_bytes = 2 * 1024 * 1024
    tile_rows_cap = max(8, target_tile_bytes // (lanes * itemsize))

    if rows <= 8:
        # Tiny input: full-extent block (the (8,128) rule is waived when the
        # block equals the full array dims).
        tile_rows = rows
    else:
        tile_rows = min(rows, tile_rows_cap)
        tile_rows = max(8, (tile_rows // 8) * 8)  # multiple of 8

    grid = (pl.cdiv(rows, tile_rows),)  # ragged tail handled by Pallas masking

    out2d = pl.pallas_call(
        _identity_kernel,
        out_shape=jax.ShapeDtypeStruct((rows, lanes), x2d.dtype),
        grid=grid,
        in_specs=[pl.BlockSpec((tile_rows, lanes), lambda i: (i, 0))],
        out_specs=pl.BlockSpec((tile_rows, lanes), lambda i: (i, 0)),
        input_output_aliases={0: 0},  # identity result may reuse input buffer
        cost_estimate=pl.CostEstimate(
            flops=0,
            transcendentals=0,
            bytes_accessed=2 * n * itemsize,
        ),
        compiler_params=pltpu.CompilerParams(
            dimension_semantics=("parallel",),
        ),
    )(x2d)

    return out2d.reshape(orig_shape)


def baseline_decoder_forward(x: jax.Array, *, exercise_pallas: bool = False) -> jax.Array:
    """Pallas equivalent of BaselineDecoder.forward (a no-op / identity).

    Default path returns `x` untouched — the reference forward performs no
    computation, so any HBM traffic would be pure overhead.  Set
    `exercise_pallas=True` to route the data through the Pallas identity
    kernel (testing / data-path validation only).
    """
    if not exercise_pallas:
        return x
    return _pallas_identity(x)


if __name__ == "__main__":
    key = jax.random.PRNGKey(0)
    # Small NCHW input consistent with a decoder-style feature map.
    x = jax.random.normal(key, (2, 4, 16, 16), dtype=jnp.float32)

    # Fast (semantically optimal) path.
    y_fast = baseline_decoder_forward(x)
    jax.block_until_ready(y_fast)

    # Exercise the Pallas identity kernel once.
    y_kernel = baseline_decoder_forward(x, exercise_pallas=True)
    jax.block_until_ready(y_kernel)

    # Sanity checks: identity semantics (reference forward has no compute).
    assert y_fast.shape == x.shape
    assert y_kernel.shape == x.shape
    assert bool(jnp.allclose(y_fast, x))
    assert bool(jnp.allclose(y_kernel, x))

    print("KERNEL_OK")
</pallas_src>

<mosaic_0001>
module attributes {stable_mosaic.version = 11 : i64} {
  func.func @_identity_kernel(%arg0: i32, %arg1: memref<4x512xf32, #tpu.memory_space<vmem>>, %arg2: memref<4x512xf32, #tpu.memory_space<vmem>>) attributes {dimension_semantics = [#tpu.dimension_semantics<parallel>], iteration_bounds = array<i64: 1>, scalar_prefetch = 0 : i64, scratch_operands = 0 : i64, tpu.core_type = #tpu.core_type<tc>, window_params = [{transform_indices = @transform_0, window_bounds = array<i64: 4, 512>}, {transform_indices = @transform_1, window_bounds = array<i64: 4, 512>}]} {
    %c0 = arith.constant 0 : index
    %c0_0 = arith.constant 0 : index
    %0 = vector.load %arg1[%c0, %c0_0] : memref<4x512xf32, #tpu.memory_space<vmem>>, vector<4x512xf32>
    %c0_1 = arith.constant 0 : index
    %c0_2 = arith.constant 0 : index
    %1 = vector.load %arg2[%c0_1, %c0_2] : memref<4x512xf32, #tpu.memory_space<vmem>>, vector<4x512xf32>
    tpu.vector_store %arg2[%c0_1, %c0_2], %0 {strides = array<i32>} : memref<4x512xf32, #tpu.memory_space<vmem>>, vector<4x512xf32>,
    return
  }
  func.func @transform_0(%arg0: i32) -> (i32, i32) {
    %c0_i32 = arith.constant 0 : i32
    %c0_i32_0 = arith.constant 0 : i32
    return %arg0, %c0_i32 : i32, i32
  }
  func.func @transform_1(%arg0: i32) -> (i32, i32) {
    %c0_i32 = arith.constant 0 : i32
    %c0_i32_0 = arith.constant 0 : i32
    return %arg0, %c0_i32 : i32, i32
  }
}

</mosaic_0001>

<bundles_post_ra>
// kernel: tpu_custom_call.1
= control target key start
LH: loop header
LB: loop body
LE: loop exit
PB: predicated region body
PF: predicated region fallthrough
CT: control target
= control target key end

     0   :  { %6 = vsyncpa [#allocation3], 0  ;;  %s116_s0 = inlined_call_operand.hbm [shape: f32[4,512], index: 0, kind: input, shape index: {}, may-alias: {0,1}]   ;;  %s117_s1 = inlined_call_operand.hbm [shape: f32[4,512], index: 1, kind: output, shape index: {}, may-alias: {0,1}]  }
   0x1   :  { %7 = vsyncpa [#allocation4], 0  ;;  %s13_s8 = sshll.u32 %s116_s0, 4  ;;  %s98_s9 = smov [#allocation2]   ;;  %s14_s8 = int_to_ptr.hbm [resolvable:$true] %s13_s8 }
   0x2   :  { %s15_s10 = sshll.u32 %s98_s9, 4  ;;  %s16_s10 = int_to_ptr.vmem [resolvable:$true] %s15_s10 }
   0x3   :  { %18 = dma.hbm_to_vmem [thread:$0]  %s14_s8, 256, %s16_s10, [#allocation3]  }
   0x4   :  { %94 = dma.done.wait [#allocation3], 256  }
   0x5   :  { %95 = vsyncadd [#allocation3], 4294967040  ;;  %s99_s11 = smov [#allocation5]   ;;  %s34_s15 = sshll.u32 %s117_s1, 4  ;;  %v23_v0 = vld [vmem:[#allocation2] sm:$0xff]  ;;  %v24_v1 = vld [vmem:[#allocation2 + $0x8] sm:$0xff]  ;;  %s35_s15 = int_to_ptr.hbm [resolvable:$true] %s34_s15 }
   0x6   :  { %s32_s12 = sshll.u32 %s99_s11, 4  ;;  %25 = vst [vmem:[#allocation5] sm:$0xff] %v23_v0  ;;  %s33_s12 = int_to_ptr.vmem [resolvable:$true] %s32_s12 }
   0x7   :  { %26 = vst [vmem:[#allocation5 + $0x8] sm:$0xff] %v24_v1 }
   0x8   :  { %37 = dma.vmem_to_hbm [thread:$0]  %s33_s12, 256, %s35_s15, [#allocation4]  }
   0x9   :  { %96 = dma.done.wait [#allocation4], 256  }
   0xa   :  { %97 = vsyncadd [#allocation4], 4294967040 }
   0xb   :  { %42 = vsyncpa [#allocation3], 1 }
   0xc   :  { %43 = vsyncpa [#allocation4], 1 }

</bundles_post_ra>
